<compile_context>
chip_gen: v7x
topology: tpu7x:2x2x1
jax: 0.10.0
libtpu: 0.0.40
codegen_flags: <defaults>
</compile_context>

<pallas_src>
import functools
import math

import jax
import jax.numpy as jnp
from jax.experimental import pallas as pl
from jax.experimental.pallas import tpu as pltpu


def _ranknet_block_kernel(pred_col_ref, true_col_ref, pred_row_ref, true_row_ref,
                          out_ref, *, tj):
    """One i-block: sum of pairwise losses for rows [i*TI, (i+1)*TI) vs all cols."""
    ti = pred_col_ref.shape[0]            # rows handled by this grid step
    n_chunks = pred_row_ref.shape[0]      # number of TJ-wide column chunks

    def chunk_body(jc, acc):              # acc: (8, tj) f32, register resident
        # Column chunk jc: dynamic index on the leading (untiled) axis.
        pred_j = jnp.broadcast_to(pred_row_ref[jc], (8, tj))   # (8, tj)
        true_j = jnp.broadcast_to(true_row_ref[jc], (8, tj))   # (8, tj)

        # Static (unrolled) loop over 8-row sublane groups of this i-block.
        for ii in range(ti // 8):
            r0 = ii * 8
            pred_i = pred_col_ref[r0:r0 + 8, :]                # (8, 1)
            true_i = true_col_ref[r0:r0 + 8, :]                # (8, 1)

            d = pred_i - pred_j                                # (8, tj)
            # softplus(s) with s = -d where true_i > true_j else d
            # (== softplus(pred_diff) - y * pred_diff, BCE-with-logits)
            s = jnp.where(true_i > true_j, -d, d)
            # TODO(synk): jnp.log1p would save one VALU add if its Mosaic
            # lowering is available; log(1+x) is kept for guaranteed lowering.
            loss = jnp.maximum(s, 0.0) + jnp.log(1.0 + jnp.exp(-jnp.abs(s)))
            acc = acc + loss                                   # pure VALU adds
        return acc

    acc = jax.lax.fori_loop(0, n_chunks, chunk_body,
                            jnp.zeros((8, tj), jnp.float32))

    # One cross-lane (XLU) reduce per i-block; replicate over the lane-dense
    # (8, 128) output tile so the store is a clean unmasked vst.
    partial = jnp.sum(acc)
    out_ref[...] = jnp.full(out_ref.shape, partial, dtype=out_ref.dtype)


def _round_up(x, m):
    return ((x + m - 1) // m) * m


def ranknet_loss(y_pred: jax.Array, y_true: jax.Array) -> jax.Array:
    """RankNet pairwise ranking loss; flattens inputs like view(-1, 1)."""
    y_pred = jnp.asarray(y_pred, jnp.float32).reshape(-1)
    y_true = jnp.asarray(y_true, jnp.float32).reshape(-1)
    n = y_pred.shape[0]

    # ---- padding / tile selection (trace-time Python) ----
    if n <= 512:
        n_pad = _round_up(n, 128)
        tj = n_pad                       # single column chunk
    else:
        n_pad = _round_up(n, 512)
        tj = 512
    if n_pad >= 1024:
        ti = 512                         # big i-block; gi = n_pad/512 >= 2
    elif n_pad >= 256:
        ti = n_pad // 2                  # gi = 2 (keeps both v7x TCs busy)
    else:
        ti = 64                          # n_pad == 128 -> gi = 2
    gi = n_pad // ti
    n_chunks = n_pad // tj
    pad = n_pad - n

    if pad:
        # Monotone huge-negative padding: every pair involving a pad element
        # contributes exactly 0 except the `pad` diagonal self-pairs, each of
        # which contributes ln(2) (subtracted below).  Assumes |real| < 1e30.
        pad_vals = -jnp.arange(1.0, pad + 1.0, dtype=jnp.float32) * jnp.float32(1e30)
        y_pred = jnp.concatenate([y_pred, pad_vals])
        y_true = jnp.concatenate([y_true, pad_vals])

    pred_col = y_pred.reshape(n_pad, 1)
    true_col = y_true.reshape(n_pad, 1)
    pred_row = y_pred.reshape(n_chunks, 1, tj)   # chunked row view for ref[jc]
    true_row = y_true.reshape(n_chunks, 1, tj)

    kernel = functools.partial(_ranknet_block_kernel, tj=tj)

    partials = pl.pallas_call(
        kernel,
        out_shape=jax.ShapeDtypeStruct((gi * 8, 128), jnp.float32),
        grid_spec=pltpu.PrefetchScalarGridSpec(
            num_scalar_prefetch=0,
            grid=(gi,),
            in_specs=[
                pl.BlockSpec((ti, 1), lambda i: (i, 0)),              # pred col
                pl.BlockSpec((ti, 1), lambda i: (i, 0)),              # true col
                pl.BlockSpec((n_chunks, 1, tj), lambda i: (0, 0, 0)),  # pred rows
                pl.BlockSpec((n_chunks, 1, tj), lambda i: (0, 0, 0)),  # true rows
            ],
            out_specs=pl.BlockSpec((8, 128), lambda i: (i, 0)),
        ),
        compiler_params=pltpu.CompilerParams(
            dimension_semantics=("parallel",),
            vmem_limit_bytes=32 << 20,
        ),
    )(pred_col, true_col, pred_row, true_row)

    # One representative per i-block (the partial is replicated over its tile),
    # subtract the exact pad-diagonal correction, divide by the true N^2.
    total = jnp.sum(partials[::8, 0]) - jnp.float32(pad) * jnp.float32(math.log(2.0))
    return total / jnp.float32(n * n)


def ranknet_loss_ref(y_pred, y_true):
    """Plain-JAX reference (mirror of the PyTorch module)."""
    y_pred = jnp.asarray(y_pred, jnp.float32).reshape(-1, 1)
    y_true = jnp.asarray(y_true, jnp.float32).reshape(-1, 1)
    pred_diff = y_pred - y_pred.T
    true_diff = y_true - y_true.T
    y_diff = (true_diff > 0).astype(jnp.float32)
    p_ij = jax.nn.sigmoid(pred_diff)
    loss = -y_diff * jnp.log(p_ij) - (1.0 - y_diff) * jnp.log(1.0 - p_ij)
    return jnp.sum(loss) / loss.size


if __name__ == "__main__":
    key = jax.random.PRNGKey(0)
    k1, k2, k3, k4, k5, k6 = jax.random.split(key, 6)

    # Primary small example: (2, 4) scores -> N = 8 flattened, 64 pairs.
    y_pred = jax.random.normal(k1, (2, 4), dtype=jnp.float32)
    y_true = jax.random.uniform(k2, (2, 4), dtype=jnp.float32)
    out = ranknet_loss(y_pred, y_true)
    jax.block_until_ready(out)
    ref = ranknet_loss_ref(y_pred, y_true)
    assert jnp.allclose(out, ref, rtol=1e-4, atol=1e-5), (out, ref)

    # Non-128-aligned N to exercise the padding path (N = 300 -> n_pad = 384).
    yp2 = jax.random.normal(k3, (3, 100), dtype=jnp.float32)
    yt2 = jax.random.uniform(k4, (3, 100), dtype=jnp.float32)
    out2 = ranknet_loss(yp2, yt2)
    jax.block_until_ready(out2)
    ref2 = ranknet_loss_ref(yp2, yt2)
    assert jnp.allclose(out2, ref2, rtol=1e-4, atol=1e-5), (out2, ref2)

    # Larger unaligned N to exercise multi-chunk fori + TI=512 i-blocks
    # (N = 1000 -> n_pad = 1024, gi = 2, 2 column chunks).
    yp3 = jax.random.normal(k5, (4, 250), dtype=jnp.float32)
    yt3 = jax.random.uniform(k6, (4, 250), dtype=jnp.float32)
    out3 = ranknet_loss(yp3, yt3)
    jax.block_until_ready(out3)
    ref3 = ranknet_loss_ref(yp3, yt3)
    assert jnp.allclose(out3, ref3, rtol=1e-4, atol=1e-5), (out3, ref3)

    print("KERNEL_OK")
</pallas_src>

<mosaic_0001>
module attributes {stable_mosaic.version = 11 : i64} {
  func.func @_ranknet_block_kernel(%arg0: i32, %arg1: memref<64x1xf32, #tpu.memory_space<vmem>>, %arg2: memref<64x1xf32, #tpu.memory_space<vmem>>, %arg3: memref<1x1x128xf32, #tpu.memory_space<vmem>>, %arg4: memref<1x1x128xf32, #tpu.memory_space<vmem>>, %arg5: memref<8x128xf32, #tpu.memory_space<vmem>>) attributes {dimension_semantics = [#tpu.dimension_semantics<parallel>], iteration_bounds = array<i64: 2>, scalar_prefetch = 0 : i64, scratch_operands = 0 : i64, tpu.core_type = #tpu.core_type<tc>, window_params = [{transform_indices = @transform_0, window_bounds = array<i64: 64, 1>}, {transform_indices = @transform_1, window_bounds = array<i64: 64, 1>}, {pipeline_mode = #tpu.pipeline_mode<synchronous>, transform_indices = @transform_2, window_bounds = array<i64: 1, 1, 128>}, {pipeline_mode = #tpu.pipeline_mode<synchronous>, transform_indices = @transform_3, window_bounds = array<i64: 1, 1, 128>}, {transform_indices = @transform_4, window_bounds = array<i64: 8, 128>}]} {
    %cst = arith.constant 0.000000e+00 : f32
    %0 = vector.broadcast %cst : f32 to vector<8x128xf32>
    %c0_i32 = arith.constant 0 : i32
    %1 = arith.index_cast %c0_i32 : i32 to index
    %c0 = arith.constant 0 : index
    %c0_0 = arith.constant 0 : index
    %2 = vector.load %arg3[%1, %c0, %c0_0] : memref<1x1x128xf32, #tpu.memory_space<vmem>>, vector<1x1x128xf32>
    %3 = vector.shape_cast %2 : vector<1x1x128xf32> to vector<1x128xf32>
    %4 = vector.shape_cast %3 : vector<1x128xf32> to vector<1x128xf32>
    %5 = vector.broadcast %4 : vector<1x128xf32> to vector<8x128xf32>
    %6 = arith.index_cast %c0_i32 : i32 to index
    %c0_1 = arith.constant 0 : index
    %c0_2 = arith.constant 0 : index
    %7 = vector.load %arg4[%6, %c0_1, %c0_2] : memref<1x1x128xf32, #tpu.memory_space<vmem>>, vector<1x1x128xf32>
    %8 = vector.shape_cast %7 : vector<1x1x128xf32> to vector<1x128xf32>
    %9 = vector.shape_cast %8 : vector<1x128xf32> to vector<1x128xf32>
    %10 = vector.broadcast %9 : vector<1x128xf32> to vector<8x128xf32>
    %c0_3 = arith.constant 0 : index
    %c0_4 = arith.constant 0 : index
    %11 = vector.load %arg1[%c0_3, %c0_4] : memref<64x1xf32, #tpu.memory_space<vmem>>, vector<8x1xf32>
    %c0_5 = arith.constant 0 : index
    %c0_6 = arith.constant 0 : index
    %12 = vector.load %arg2[%c0_5, %c0_6] : memref<64x1xf32, #tpu.memory_space<vmem>>, vector<8x1xf32>
    %13 = vector.broadcast %11 : vector<8x1xf32> to vector<8x128xf32>
    %14 = arith.subf %13, %5 : vector<8x128xf32>
    %15 = vector.broadcast %12 : vector<8x1xf32> to vector<8x128xf32>
    %16 = arith.cmpf ogt, %15, %10 : vector<8x128xf32>
    %cst_7 = arith.constant 0.000000e+00 : f32
    %17 = vector.broadcast %cst_7 : f32 to vector<8x128xf32>
    %18 = arith.subf %17, %14 : vector<8x128xf32>
    %19 = arith.select %16, %18, %14 : vector<8x128xi1>, vector<8x128xf32>
    %cst_8 = arith.constant 0.000000e+00 : f32
    %20 = vector.broadcast %cst_8 : f32 to vector<8x128xf32>
    %21 = arith.maximumf %19, %20 : vector<8x128xf32>
    %22 = math.absf %19 : vector<8x128xf32>
    %cst_9 = arith.constant 0.000000e+00 : f32
    %23 = vector.broadcast %cst_9 : f32 to vector<8x128xf32>
    %24 = arith.subf %23, %22 : vector<8x128xf32>
    %25 = math.exp %24 : vector<8x128xf32>
    %cst_10 = arith.constant 1.000000e+00 : f32
    %26 = vector.broadcast %cst_10 : f32 to vector<8x128xf32>
    %27 = arith.addf %26, %25 : vector<8x128xf32>
    %28 = math.log %27 : vector<8x128xf32>
    %29 = arith.addf %21, %28 : vector<8x128xf32>
    %30 = arith.addf %0, %29 : vector<8x128xf32>
    %c8 = arith.constant 8 : index
    %c0_11 = arith.constant 0 : index
    %31 = vector.load %arg1[%c8, %c0_11] : memref<64x1xf32, #tpu.memory_space<vmem>>, vector<8x1xf32>
    %c8_12 = arith.constant 8 : index
    %c0_13 = arith.constant 0 : index
    %32 = vector.load %arg2[%c8_12, %c0_13] : memref<64x1xf32, #tpu.memory_space<vmem>>, vector<8x1xf32>
    %33 = vector.broadcast %31 : vector<8x1xf32> to vector<8x128xf32>
    %34 = arith.subf %33, %5 : vector<8x128xf32>
    %35 = vector.broadcast %32 : vector<8x1xf32> to vector<8x128xf32>
    %36 = arith.cmpf ogt, %35, %10 : vector<8x128xf32>
    %cst_14 = arith.constant 0.000000e+00 : f32
    %37 = vector.broadcast %cst_14 : f32 to vector<8x128xf32>
    %38 = arith.subf %37, %34 : vector<8x128xf32>
    %39 = arith.select %36, %38, %34 : vector<8x128xi1>, vector<8x128xf32>
    %cst_15 = arith.constant 0.000000e+00 : f32
    %40 = vector.broadcast %cst_15 : f32 to vector<8x128xf32>
    %41 = arith.maximumf %39, %40 : vector<8x128xf32>
    %42 = math.absf %39 : vector<8x128xf32>
    %cst_16 = arith.constant 0.000000e+00 : f32
    %43 = vector.broadcast %cst_16 : f32 to vector<8x128xf32>
    %44 = arith.subf %43, %42 : vector<8x128xf32>
    %45 = math.exp %44 : vector<8x128xf32>
    %cst_17 = arith.constant 1.000000e+00 : f32
    %46 = vector.broadcast %cst_17 : f32 to vector<8x128xf32>
    %47 = arith.addf %46, %45 : vector<8x128xf32>
    %48 = math.log %47 : vector<8x128xf32>
    %49 = arith.addf %41, %48 : vector<8x128xf32>
    %50 = arith.addf %30, %49 : vector<8x128xf32>
    %c16 = arith.constant 16 : index
    %c0_18 = arith.constant 0 : index
    %51 = vector.load %arg1[%c16, %c0_18] : memref<64x1xf32, #tpu.memory_space<vmem>>, vector<8x1xf32>
    %c16_19 = arith.constant 16 : index
    %c0_20 = arith.constant 0 : index
    %52 = vector.load %arg2[%c16_19, %c0_20] : memref<64x1xf32, #tpu.memory_space<vmem>>, vector<8x1xf32>
    %53 = vector.broadcast %51 : vector<8x1xf32> to vector<8x128xf32>
    %54 = arith.subf %53, %5 : vector<8x128xf32>
    %55 = vector.broadcast %52 : vector<8x1xf32> to vector<8x128xf32>
    %56 = arith.cmpf ogt, %55, %10 : vector<8x128xf32>
    %cst_21 = arith.constant 0.000000e+00 : f32
    %57 = vector.broadcast %cst_21 : f32 to vector<8x128xf32>
    %58 = arith.subf %57, %54 : vector<8x128xf32>
    %59 = arith.select %56, %58, %54 : vector<8x128xi1>, vector<8x128xf32>
    %cst_22 = arith.constant 0.000000e+00 : f32
    %60 = vector.broadcast %cst_22 : f32 to vector<8x128xf32>
    %61 = arith.maximumf %59, %60 : vector<8x128xf32>
    %62 = math.absf %59 : vector<8x128xf32>
    %cst_23 = arith.constant 0.000000e+00 : f32
    %63 = vector.broadcast %cst_23 : f32 to vector<8x128xf32>
    %64 = arith.subf %63, %62 : vector<8x128xf32>
    %65 = math.exp %64 : vector<8x128xf32>
    %cst_24 = arith.constant 1.000000e+00 : f32
    %66 = vector.broadcast %cst_24 : f32 to vector<8x128xf32>
    %67 = arith.addf %66, %65 : vector<8x128xf32>
    %68 = math.log %67 : vector<8x128xf32>
    %69 = arith.addf %61, %68 : vector<8x128xf32>
    %70 = arith.addf %50, %69 : vector<8x128xf32>
    %c24 = arith.constant 24 : index
    %c0_25 = arith.constant 0 : index
    %71 = vector.load %arg1[%c24, %c0_25] : memref<64x1xf32, #tpu.memory_space<vmem>>, vector<8x1xf32>
    %c24_26 = arith.constant 24 : index
    %c0_27 = arith.constant 0 : index
    %72 = vector.load %arg2[%c24_26, %c0_27] : memref<64x1xf32, #tpu.memory_space<vmem>>, vector<8x1xf32>
    %73 = vector.broadcast %71 : vector<8x1xf32> to vector<8x128xf32>
    %74 = arith.subf %73, %5 : vector<8x128xf32>
    %75 = vector.broadcast %72 : vector<8x1xf32> to vector<8x128xf32>
    %76 = arith.cmpf ogt, %75, %10 : vector<8x128xf32>
    %cst_28 = arith.constant 0.000000e+00 : f32
    %77 = vector.broadcast %cst_28 : f32 to vector<8x128xf32>
    %78 = arith.subf %77, %74 : vector<8x128xf32>
    %79 = arith.select %76, %78, %74 : vector<8x128xi1>, vector<8x128xf32>
    %cst_29 = arith.constant 0.000000e+00 : f32
    %80 = vector.broadcast %cst_29 : f32 to vector<8x128xf32>
    %81 = arith.maximumf %79, %80 : vector<8x128xf32>
    %82 = math.absf %79 : vector<8x128xf32>
    %cst_30 = arith.constant 0.000000e+00 : f32
    %83 = vector.broadcast %cst_30 : f32 to vector<8x128xf32>
    %84 = arith.subf %83, %82 : vector<8x128xf32>
    %85 = math.exp %84 : vector<8x128xf32>
    %cst_31 = arith.constant 1.000000e+00 : f32
    %86 = vector.broadcast %cst_31 : f32 to vector<8x128xf32>
    %87 = arith.addf %86, %85 : vector<8x128xf32>
    %88 = math.log %87 : vector<8x128xf32>
    %89 = arith.addf %81, %88 : vector<8x128xf32>
    %90 = arith.addf %70, %89 : vector<8x128xf32>
    %c32 = arith.constant 32 : index
    %c0_32 = arith.constant 0 : index
    %91 = vector.load %arg1[%c32, %c0_32] : memref<64x1xf32, #tpu.memory_space<vmem>>, vector<8x1xf32>
    %c32_33 = arith.constant 32 : index
    %c0_34 = arith.constant 0 : index
    %92 = vector.load %arg2[%c32_33, %c0_34] : memref<64x1xf32, #tpu.memory_space<vmem>>, vector<8x1xf32>
    %93 = vector.broadcast %91 : vector<8x1xf32> to vector<8x128xf32>
    %94 = arith.subf %93, %5 : vector<8x128xf32>
    %95 = vector.broadcast %92 : vector<8x1xf32> to vector<8x128xf32>
    %96 = arith.cmpf ogt, %95, %10 : vector<8x128xf32>
    %cst_35 = arith.constant 0.000000e+00 : f32
    %97 = vector.broadcast %cst_35 : f32 to vector<8x128xf32>
    %98 = arith.subf %97, %94 : vector<8x128xf32>
    %99 = arith.select %96, %98, %94 : vector<8x128xi1>, vector<8x128xf32>
    %cst_36 = arith.constant 0.000000e+00 : f32
    %100 = vector.broadcast %cst_36 : f32 to vector<8x128xf32>
    %101 = arith.maximumf %99, %100 : vector<8x128xf32>
    %102 = math.absf %99 : vector<8x128xf32>
    %cst_37 = arith.constant 0.000000e+00 : f32
    %103 = vector.broadcast %cst_37 : f32 to vector<8x128xf32>
    %104 = arith.subf %103, %102 : vector<8x128xf32>
    %105 = math.exp %104 : vector<8x128xf32>
    %cst_38 = arith.constant 1.000000e+00 : f32
    %106 = vector.broadcast %cst_38 : f32 to vector<8x128xf32>
    %107 = arith.addf %106, %105 : vector<8x128xf32>
    %108 = math.log %107 : vector<8x128xf32>
    %109 = arith.addf %101, %108 : vector<8x128xf32>
    %110 = arith.addf %90, %109 : vector<8x128xf32>
    %c40 = arith.constant 40 : index
    %c0_39 = arith.constant 0 : index
    %111 = vector.load %arg1[%c40, %c0_39] : memref<64x1xf32, #tpu.memory_space<vmem>>, vector<8x1xf32>
    %c40_40 = arith.constant 40 : index
    %c0_41 = arith.constant 0 : index
    %112 = vector.load %arg2[%c40_40, %c0_41] : memref<64x1xf32, #tpu.memory_space<vmem>>, vector<8x1xf32>
    %113 = vector.broadcast %111 : vector<8x1xf32> to vector<8x128xf32>
    %114 = arith.subf %113, %5 : vector<8x128xf32>
    %115 = vector.broadcast %112 : vector<8x1xf32> to vector<8x128xf32>
    %116 = arith.cmpf ogt, %115, %10 : vector<8x128xf32>
    %cst_42 = arith.constant 0.000000e+00 : f32
    %117 = vector.broadcast %cst_42 : f32 to vector<8x128xf32>
    %118 = arith.subf %117, %114 : vector<8x128xf32>
    %119 = arith.select %116, %118, %114 : vector<8x128xi1>, vector<8x128xf32>
    %cst_43 = arith.constant 0.000000e+00 : f32
    %120 = vector.broadcast %cst_43 : f32 to vector<8x128xf32>
    %121 = arith.maximumf %119, %120 : vector<8x128xf32>
    %122 = math.absf %119 : vector<8x128xf32>
    %cst_44 = arith.constant 0.000000e+00 : f32
    %123 = vector.broadcast %cst_44 : f32 to vector<8x128xf32>
    %124 = arith.subf %123, %122 : vector<8x128xf32>
    %125 = math.exp %124 : vector<8x128xf32>
    %cst_45 = arith.constant 1.000000e+00 : f32
    %126 = vector.broadcast %cst_45 : f32 to vector<8x128xf32>
    %127 = arith.addf %126, %125 : vector<8x128xf32>
    %128 = math.log %127 : vector<8x128xf32>
    %129 = arith.addf %121, %128 : vector<8x128xf32>
    %130 = arith.addf %110, %129 : vector<8x128xf32>
    %c48 = arith.constant 48 : index
    %c0_46 = arith.constant 0 : index
    %131 = vector.load %arg1[%c48, %c0_46] : memref<64x1xf32, #tpu.memory_space<vmem>>, vector<8x1xf32>
    %c48_47 = arith.constant 48 : index
    %c0_48 = arith.constant 0 : index
    %132 = vector.load %arg2[%c48_47, %c0_48] : memref<64x1xf32, #tpu.memory_space<vmem>>, vector<8x1xf32>
    %133 = vector.broadcast %131 : vector<8x1xf32> to vector<8x128xf32>
    %134 = arith.subf %133, %5 : vector<8x128xf32>
    %135 = vector.broadcast %132 : vector<8x1xf32> to vector<8x128xf32>
    %136 = arith.cmpf ogt, %135, %10 : vector<8x128xf32>
    %cst_49 = arith.constant 0.000000e+00 : f32
    %137 = vector.broadcast %cst_49 : f32 to vector<8x128xf32>
    %138 = arith.subf %137, %134 : vector<8x128xf32>
    %139 = arith.select %136, %138, %134 : vector<8x128xi1>, vector<8x128xf32>
    %cst_50 = arith.constant 0.000000e+00 : f32
    %140 = vector.broadcast %cst_50 : f32 to vector<8x128xf32>
    %141 = arith.maximumf %139, %140 : vector<8x128xf32>
    %142 = math.absf %139 : vector<8x128xf32>
    %cst_51 = arith.constant 0.000000e+00 : f32
    %143 = vector.broadcast %cst_51 : f32 to vector<8x128xf32>
    %144 = arith.subf %143, %142 : vector<8x128xf32>
    %145 = math.exp %144 : vector<8x128xf32>
    %cst_52 = arith.constant 1.000000e+00 : f32
    %146 = vector.broadcast %cst_52 : f32 to vector<8x128xf32>
    %147 = arith.addf %146, %145 : vector<8x128xf32>
    %148 = math.log %147 : vector<8x128xf32>
    %149 = arith.addf %141, %148 : vector<8x128xf32>
    %150 = arith.addf %130, %149 : vector<8x128xf32>
    %c56 = arith.constant 56 : index
    %c0_53 = arith.constant 0 : index
    %151 = vector.load %arg1[%c56, %c0_53] : memref<64x1xf32, #tpu.memory_space<vmem>>, vector<8x1xf32>
    %c56_54 = arith.constant 56 : index
    %c0_55 = arith.constant 0 : index
    %152 = vector.load %arg2[%c56_54, %c0_55] : memref<64x1xf32, #tpu.memory_space<vmem>>, vector<8x1xf32>
    %153 = vector.broadcast %151 : vector<8x1xf32> to vector<8x128xf32>
    %154 = arith.subf %153, %5 : vector<8x128xf32>
    %155 = vector.broadcast %152 : vector<8x1xf32> to vector<8x128xf32>
    %156 = arith.cmpf ogt, %155, %10 : vector<8x128xf32>
    %cst_56 = arith.constant 0.000000e+00 : f32
    %157 = vector.broadcast %cst_56 : f32 to vector<8x128xf32>
    %158 = arith.subf %157, %154 : vector<8x128xf32>
    %159 = arith.select %156, %158, %154 : vector<8x128xi1>, vector<8x128xf32>
    %cst_57 = arith.constant 0.000000e+00 : f32
    %160 = vector.broadcast %cst_57 : f32 to vector<8x128xf32>
    %161 = arith.maximumf %159, %160 : vector<8x128xf32>
    %162 = math.absf %159 : vector<8x128xf32>
    %cst_58 = arith.constant 0.000000e+00 : f32
    %163 = vector.broadcast %cst_58 : f32 to vector<8x128xf32>
    %164 = arith.subf %163, %162 : vector<8x128xf32>
    %165 = math.exp %164 : vector<8x128xf32>
    %cst_59 = arith.constant 1.000000e+00 : f32
    %166 = vector.broadcast %cst_59 : f32 to vector<8x128xf32>
    %167 = arith.addf %166, %165 : vector<8x128xf32>
    %168 = math.log %167 : vector<8x128xf32>
    %169 = arith.addf %161, %168 : vector<8x128xf32>
    %170 = arith.addf %150, %169 : vector<8x128xf32>
    %c1_i32 = arith.constant 1 : i32
    %171 = vector.shape_cast %170 : vector<8x128xf32> to vector<1x8x128xf32>
    %cst_60 = arith.constant dense<0.000000e+00> : vector<1xf32>
    %172 = vector.multi_reduction <add>, %171, %cst_60 [1, 2] : vector<1x8x128xf32> to vector<1xf32>
    %173 = vector.shape_cast %172 : vector<1xf32> to vector<1x1x1xf32>
    %174 = vector.extract %173[0, 0, 0] : f32 from vector<1x1x1xf32>
    %175 = vector.broadcast %174 : f32 to vector<8x128xf32>
    %c0_61 = arith.constant 0 : index
    %c0_62 = arith.constant 0 : index
    %176 = vector.load %arg5[%c0_61, %c0_62] : memref<8x128xf32, #tpu.memory_space<vmem>>, vector<8x128xf32>
    tpu.vector_store %arg5[%c0_61, %c0_62], %175 {strides = array<i32>} : memref<8x128xf32, #tpu.memory_space<vmem>>, vector<8x128xf32>,
    return
  }
  func.func @transform_0(%arg0: i32) -> (i32, i32) {
    %c0_i32 = arith.constant 0 : i32
    %c0_i32_0 = arith.constant 0 : i32
    return %arg0, %c0_i32 : i32, i32
  }
  func.func @transform_1(%arg0: i32) -> (i32, i32) {
    %c0_i32 = arith.constant 0 : i32
    %c0_i32_0 = arith.constant 0 : i32
    return %arg0, %c0_i32 : i32, i32
  }
  func.func @transform_2(%arg0: i32) -> (i32, i32, i32) {
    %c0_i32 = arith.constant 0 : i32
    %c0_i32_0 = arith.constant 0 : i32
    %c0_i32_1 = arith.constant 0 : i32
    %c0_i32_2 = arith.constant 0 : i32
    return %c0_i32, %c0_i32_0, %c0_i32_1 : i32, i32, i32
  }
  func.func @transform_3(%arg0: i32) -> (i32, i32, i32) {
    %c0_i32 = arith.constant 0 : i32
    %c0_i32_0 = arith.constant 0 : i32
    %c0_i32_1 = arith.constant 0 : i32
    %c0_i32_2 = arith.constant 0 : i32
    return %c0_i32, %c0_i32_0, %c0_i32_1 : i32, i32, i32
  }
  func.func @transform_4(%arg0: i32) -> (i32, i32) {
    %c0_i32 = arith.constant 0 : i32
    %c0_i32_0 = arith.constant 0 : i32
    return %arg0, %c0_i32 : i32, i32
  }
}

</mosaic_0001>

<bundles_post_ra>
// kernel: tpu_custom_call.1
= control target key start
LH: loop header
LB: loop body
LE: loop exit
PB: predicated region body
PF: predicated region fallthrough
CT: control target
= control target key end

     0   :  { %9 = vsyncpa [#allocation3], 0  ;;  %s870_s0 = inlined_call_operand.vmem [shape: f32[128,1], index: 0, kind: input, shape index: {}]   ;;  %s871_s1 = inlined_call_operand.vmem [shape: f32[128,1], index: 1, kind: input, shape index: {}]   ;;  %s872_s2 = inlined_call_operand.vmem [shape: f32[1,1,128], index: 2, kind: input, shape index: {}]   ;;  %s873_s3 = inlined_call_operand.vmem [shape: f32[1,1,128], index: 3, kind: input, shape index: {}]   ;;  %s874_s4 = inlined_call_operand.hbm [shape: f32[16,128], index: 4, kind: output, shape index: {}]  }
   0x1   :  { %11 = vsyncpa [#allocation3 + $0x1], 0  ;;  %s720_s15 = smov 0   ;;  %s722_s16 = smov 0  }
   0x2   :  { %s724_s17 = smov 0   ;;  %s726_s18 = smov 0  }
   0x3 LB: > { %s741_s19 = sadd.s32 4294967295, %s691_s18   ;;  %s538_s20 = sadd.s32 4294967294, %s691_s18   ;;  %s691_s18 = sphi %s726_s18, %s880_s18   ;;  %s687_s17 = sphi %s724_s17, %s879_s17   ;;  %s683_s16 = sphi %s722_s16, %s878_s16   ;;  %s679_s15 = sphi %s720_s15, %s877_s15  }
   0x4   : > { %s745_s21 = sadd.s32 1, %s691_s18   ;;  %s118_s22 = sadd.s32 1, %s687_s17 }
   0x5   : > { %s115_s23 = ssub.s32 %s691_s18, %s745_s21  ;;  %p128_p0 = scmp.ne.s32.totalorder %s687_s17, %s683_s16 }
   0x6   : > { %p116_p1 = scmp.eq.s32.totalorder %s115_s23, 0  ;;  %p129_p2 = scmp.eq.s32.totalorder %s741_s19, 1 }
   0x7   : > { %p134_p3 = scmp.ne.s32.totalorder %s683_s16, %s679_s15  ;;  %p135_p4 = scmp.eq.s32.totalorder %s538_s20, 1 }
   0x8   : > { %s756_s24 = scalar_select %p116_p1, %s687_s17, %s118_s22  }
   0x9   : > { %p758_p5 = por %p129_p2, %p128_p0  ;;  %p762_p6 = por %p135_p4, %p134_p3 }
   0xa   : > { %p541_p7 = scmp.ge.s32.totalorder %s691_s18, 1  ;;  %p177_p8 = scmp.lt.s32.totalorder %s691_s18, 3 }
   0xc   : > { %p178_p9 = pnand %p541_p7, %p177_p8 }
   0xd   : > { %s543_s27 = sshll.u32 (!%p178_p9), %s741_s19, 3  ;;  %v693_v0 = vmov (!%p178_p9), 0   ;;  %v547_v17 = vld [vmem:[%s872_s2] ss:$0 sm:$0xff] (!%p178_p9)  ;;  %s205_s13 = sand.u32 (!%p178_p9), 1, %s683_s16  }
   0xe   : > { %181 = sbr.rel (%p178_p9) target bundleno = 442 (0x1ba), region = 36  ;;  %596 = vset.pattern.permute.xlu1 (!%p178_p9), %v693_v0  ;;  %595 = vset.pattern.permute.xlu0 (!%p178_p9), %v693_v0  ;;  %p209_p10 = scmp.lt.s32.totalorder (!%p178_p9), %s543_s27, 15  ;;  %v781_v21 = vld [vmem:[%s873_s3] ss:$0 sm:$0xff] (!%p178_p9) }
   0xf   : > { %s542_s14 = sshll.u32 (!%p178_p9), %s205_s13, 3  ;;  %s550_s23 = sshll.u32 (!%p178_p9), %s741_s19, 7 }
  0x10   : > { %s207_s20 = scalar_lea.vmem (!%p178_p9), [#allocation2], %s542_s14  ;;  %s830_s30 = scalar_lea.hbm (!%p178_p9), %s874_s4, %s550_s23 }
  0x11   : > { %s467_s22 = sshll.u32 (!%p178_p9), %s207_s20, 4  ;;  %s694_s19 = smov (!%p178_p9), [#allocation2]   ;;  %s825_s22 = int_to_ptr.vmem [resolvable:$true] %s467_s22 }
  0x12   : > { %s629_s6 = scalar_lea.vmem (!%p178_p9), %s825_s22, 128  ;;  %s633_s7 = sshll.u32 (!%p178_p9), %s694_s19, 4  ;;  %s634_s7 = int_to_ptr.vmem [resolvable:$false] %s633_s7 }
  0x13   : > { %p630_p11 = scmp.ne.s32.totalorder (!%p178_p9), %s825_s22, %s629_s6  ;;  %p636_p0 = scmp.lt.s32.totalorder (!%p178_p9), %s825_s22, %s634_s7 }
  0x15   : > { %s882_s27 = smov (!%p209_p10, %s543_s27), 15  ;;  %p631_p12 = pnand %p630_p11, %p758_p5 }
  0x16   : > { %s544_s28 = sshll.u32 %s882_s27, 3 }
  0x17   : > { %s212_s5 = scalar_lea.vmem %s870_s0, %s544_s28  ;;  %s218_s8 = scalar_lea.vmem %s871_s1, %s544_s28 }
  0x18   : > { %v286_v1 = vld [vmem:[%s212_s5 + $0x10] sm:$0xff]  ;;  %v234_v2 = vld [vmem:[%s212_s5] sm:$0xff]  ;;  %v260_v4 = vld [vmem:[%s212_s5 + $0x8] sm:$0xff]  ;;  %p632_p13 = pneg %p631_p12 }
  0x19   : > { %290 = vperm.xlu1 %596, %v286_v1   ;;  %238 = vperm.xlu0 %595, %v234_v2   ;;  %v235_v3 = vld [vmem:[%s218_s8] sm:$0xff]  ;;  %v312_v5 = vld [vmem:[%s212_s5 + $0x18] sm:$0xff]  ;;  %v261_v6 = vld [vmem:[%s218_s8 + $0x8] sm:$0xff] }
  0x1a   : > { %v338_v7 = vld [vmem:[%s212_s5 + $0x20] sm:$0xff]  ;;  %v287_v8 = vld [vmem:[%s218_s8 + $0x10] sm:$0xff]  ;;  %v364_v9 = vld [vmem:[%s212_s5 + $0x28] sm:$0xff] }
  0x1b   : > { %v313_v10 = vld [vmem:[%s218_s8 + $0x18] sm:$0xff]  ;;  %v390_v11 = vld [vmem:[%s212_s5 + $0x30] sm:$0xff]  ;;  %v339_v12 = vld [vmem:[%s218_s8 + $0x20] sm:$0xff] }
  0x1c   : > { %v416_v13 = vld [vmem:[%s212_s5 + $0x38] sm:$0xff]  ;;  %v365_v14 = vld [vmem:[%s218_s8 + $0x28] sm:$0xff]  ;;  %v391_v16 = vld [vmem:[%s218_s8 + $0x30] sm:$0xff]  ;;  %s454_s5 = scalar_lea.sflag [#allocation3], %s205_s13 }
  0x1d   : > { %244 = vperm.xlu1 %596, %v235_v3   ;;  %264 = vperm.xlu0 %595, %v260_v4   ;;  %v417_v15 = vld [vmem:[%s218_s8 + $0x38] sm:$0xff]  ;;  %s635_s8 = scalar_lea.vmem %s634_s7, 256 }
  0x1e   : > { %p637_p1 = scmp.lt.s32.totalorder %s635_s8, %s629_s6 }
  0x20   : > { %p638_p2 = por %p637_p1, %p636_p0 }
  0x21   : > { %316 = vperm.xlu1 %596, %v312_v5   ;;  %270 = vperm.xlu0 %595, %v261_v6  }
  0x22   : > { %p639_p3 = pnand %p638_p2, %p632_p13 }
  0x25   : > { %342 = vperm.xlu1 %596, %v338_v7   ;;  %296 = vperm.xlu0 %595, %v287_v8  }
  0x29   : > { %368 = vperm.xlu1 %596, %v364_v9   ;;  %322 = vperm.xlu0 %595, %v313_v10  }
  0x2d   : > { %394 = vperm.xlu1 %596, %v390_v11   ;;  %348 = vperm.xlu0 %595, %v339_v12  }
  0x31   : > { %420 = vperm.xlu1 %596, %v416_v13   ;;  %374 = vperm.xlu0 %595, %v365_v14  }
  0x35   : > { %426 = vperm.xlu1 %596, %v417_v15   ;;  %400 = vperm.xlu0 %595, %v391_v16  }
  0x98   : > { %v291_v18 = vpop.permute.xlu1 %290  ;;  %v239_v19 = vpop.permute.xlu0 %238 }
  0x99   : > { %v241_v20 = vsub.f32 %v239_v19, %v547_v17  ;;  %v293_v29 = vsub.f32 %v291_v18, %v547_v17 }
  0x9b   : > { %v248_v22 = vsub.f32 0.0, %v241_v20  ;;  %v300_v35 = vsub.f32 0.0, %v293_v29 }
  0x9c   : > { %v245_v23 = vpop.permute.xlu1 %244  ;;  %v265_v24 = vpop.permute.xlu0 %264 }
  0x9d   : > { %vm247_vm0 = vcmp.gt.f32.partialorder %v245_v23, %v781_v21  ;;  %v267_v25 = vsub.f32 %v265_v24, %v547_v17 }
  0x9e   : > { %v784_v26 = vsel %vm247_vm0, %v248_v22, %v241_v20 }
  0x9f   : > { %v251_v27 = vand.u32 2147483647, %v784_v26  ;;  %v274_v28 = vsub.f32 0.0, %v267_v25 }
  0xa0   : > { %v317_v30 = vpop.permute.xlu1 %316  ;;  %v271_v31 = vpop.permute.xlu0 %270 }
  0xa1   : > { %vm273_vm1 = vcmp.gt.f32.partialorder %v271_v31, %v781_v21  ;;  %v252_v32 = vsub.f32 0.0, %v251_v27  ;;  %v319_v36 = vsub.f32 %v317_v30, %v547_v17 }
  0xa2   : > { %v788_v33 = vsel %vm273_vm1, %v274_v28, %v267_v25 }
  0xa3   : > { %v277_v34 = vand.u32 2147483647, %v788_v33  ;;  %v253_v40 = vmul.f32 1.442695, %v252_v32  ;;  %v326_v44 = vsub.f32 0.0, %v319_v36 }
  0xa4   : > { %v343_v37 = vpop.permute.xlu1 %342  ;;  %v297_v38 = vpop.permute.xlu0 %296 }
  0xa5   : > { %v278_v39 = vsub.f32 0.0, %v277_v34  ;;  %vm299_vm2 = vcmp.gt.f32.partialorder %v297_v38, %v781_v21  ;;  %v345_v45 = vsub.f32 %v343_v37, %v547_v17  ;;  %597 = vpow2.f32 %v253_v40 }
  0xa6   : > { %v792_v41 = vsel %vm299_vm2, %v300_v35, %v293_v29 }
  0xa7   : > { %v279_v42 = vmul.f32 1.442695, %v278_v39  ;;  %v303_v43 = vand.u32 2147483647, %v792_v41  ;;  %v352_v52 = vsub.f32 0.0, %v345_v45 }
  0xa8   : > { %v369_v46 = vpop.permute.xlu1 %368  ;;  %v323_v47 = vpop.permute.xlu0 %322 }
  0xa9   : > { %v304_v48 = vsub.f32 0.0, %v303_v43  ;;  %vm325_vm3 = vcmp.gt.f32.partialorder %v323_v47, %v781_v21  ;;  %599 = vpow2.f32 %v279_v42  ;;  %v371_v53 = vsub.f32 %v369_v46, %v547_v17 }
  0xaa   : > { %v796_v49 = vsel %vm325_vm3, %v326_v44, %v319_v36  ;;  %v276_v44 = vmax.f32 %v788_v33, 0.0  ;;  %v250_v47 = vmax.f32 %v784_v26, 0.0 }
  0xab   : > { %v305_v50 = vmul.f32 1.442695, %v304_v48  ;;  %v329_v51 = vand.u32 2147483647, %v796_v49  ;;  %v378_v60 = vsub.f32 0.0, %v371_v53 }
  0xac   : > { %v395_v54 = vpop.permute.xlu1 %394  ;;  %v349_v55 = vpop.permute.xlu0 %348 }
  0xad   : > { %601 = vpow2.f32 %v305_v50  ;;  %v330_v56 = vsub.f32 0.0, %v329_v51  ;;  %vm351_vm4 = vcmp.gt.f32.partialorder %v349_v55, %v781_v21  ;;  %v397_v61 = vsub.f32 %v395_v54, %v547_v17 }
  0xae   : > { %v800_v57 = vsel %vm351_vm4, %v352_v52, %v345_v45  ;;  %v302_v50 = vmax.f32 %v792_v41, 0.0  ;;  %v328_v54 = vmax.f32 %v796_v49, 0.0 }
  0xaf   : > { %v331_v58 = vmul.f32 1.442695, %v330_v56  ;;  %v355_v59 = vand.u32 2147483647, %v800_v57  ;;  %v598_v6 = vpop.eup %597  ;;  %v404_v7 = vsub.f32 0.0, %v397_v61 }
  0xb0   : > { %v421_v62 = vpop.permute.xlu1 %420  ;;  %v375_v63 = vpop.permute.xlu0 %374  ;;  %v255_v15 = vadd.f32 1.0, %v598_v6 }
  0xb1   : > { %603 = vpow2.f32 %v331_v58  ;;  %v356_v0 = vsub.f32 0.0, %v355_v59  ;;  %v423_v1 = vsub.f32 %v421_v62, %v547_v17  ;;  %vm377_vm5 = vcmp.gt.f32.partialorder %v375_v63, %v781_v21 }
  0xb2   : > { %v804_v2 = vsel %vm377_vm5, %v378_v60, %v371_v53  ;;  %v354_v60 = vmax.f32 %v800_v57, 0.0 }
  0xb3   : > { %v357_v3 = vmul.f32 1.442695, %v356_v0  ;;  %v430_v4 = vsub.f32 0.0, %v423_v1  ;;  %v381_v5 = vand.u32 2147483647, %v804_v2  ;;  %v600_v10 = vpop.eup %599  ;;  %v380_v63 = vmax.f32 %v804_v2, 0.0 }
  0xb4   : > { %v427_v8 = vpop.permute.xlu1 %426  ;;  %v401_v9 = vpop.permute.xlu0 %400  ;;  %v281_v18 = vadd.f32 1.0, %v600_v10 }
  0xb5   : > { %605 = vpow2.f32 %v357_v3  ;;  %v382_v11 = vsub.f32 0.0, %v381_v5  ;;  %vm429_vm6 = vcmp.gt.f32.partialorder %v427_v8, %v781_v21  ;;  %vm403_vm7 = vcmp.gt.f32.partialorder %v401_v9, %v781_v21 }
  0xb6   : > { %v809_v12 = vsel %vm429_vm6, %v430_v4, %v423_v1  ;;  %v811_v13 = vsel %vm403_vm7, %v404_v7, %v397_v61 }
  0xb7   : > { %v602_v14 = vpop.eup %601  ;;  %v383_v16 = vmul.f32 1.442695, %v382_v11  ;;  %v433_v17 = vand.u32 2147483647, %v809_v12  ;;  %v407_v19 = vand.u32 2147483647, %v811_v13 }
  0xb8   : > { %v307_v22 = vadd.f32 1.0, %v602_v14  ;;  %v406_v3 = vmax.f32 %v811_v13, 0.0  ;;  %v432_v6 = vmax.f32 %v809_v12, 0.0 }
  0xb9   : > { %607 = vpow2.f32 %v383_v16  ;;  %v434_v20 = vsub.f32 0.0, %v433_v17  ;;  %v408_v23 = vsub.f32 0.0, %v407_v19 }
  0xba   : > { %609 = vlog2.f32 %v255_v15 }
  0xbb   : > { %v604_v24 = vpop.eup %603  ;;  %v435_v25 = vmul.f32 1.442695, %v434_v20  ;;  %611 = vlog2.f32 %v281_v18  ;;  %v409_v27 = vmul.f32 1.442695, %v408_v23 }
  0xbc   : > { %v333_v21 = vadd.f32 1.0, %v604_v24 }
  0xbd   : > { %613 = vpow2.f32 %v435_v25 }
  0xbe   : > { %615 = vlog2.f32 %v307_v22 }
  0xbf   : > { %v606_v28 = vpop.eup %605  ;;  %617 = vpow2.f32 %v409_v27 }
  0xc0   : > { %619 = vlog2.f32 %v333_v21  ;;  %v359_v29 = vadd.f32 1.0, %v606_v28 }
  0xc2   : > { %621 = vlog2.f32 %v359_v29 }
  0xc3   : > { %v608_v30 = vpop.eup %607 }
  0xc4   : > { %v385_v31 = vadd.f32 1.0, %v608_v30  ;;  %v610_v32 = vpop.eup %609 }
  0xc5   : > { %v612_v34 = vpop.eup %611  ;;  %v257_v43 = vmul.f32 0.6931472, %v610_v32 }
  0xc6   : > { %623 = vlog2.f32 %v385_v31  ;;  %v283_v39 = vmul.f32 0.6931472, %v612_v34 }
  0xc7   : > { %v614_v35 = vpop.eup %613  ;;  %v258_v52 = vadd.f32 %v257_v43, %v250_v47 }
  0xc8   : > { %v616_v36 = vpop.eup %615  ;;  %v437_v37 = vadd.f32 1.0, %v614_v35  ;;  %v284_v48 = vadd.f32 %v283_v39, %v276_v44 }
  0xc9   : > { %v618_v38 = vpop.eup %617  ;;  %v309_v45 = vmul.f32 0.6931472, %v616_v36 }
  0xca   : > { %v620_v40 = vpop.eup %619  ;;  %v411_v42 = vadd.f32 1.0, %v618_v38  ;;  %625 = vlog2.f32 %v437_v37  ;;  %v285_v58 = vadd.f32 %v284_v48, %v258_v52 }
  0xcb   : > { %v335_v51 = vmul.f32 0.6931472, %v620_v40  ;;  %v310_v53 = vadd.f32 %v309_v45, %v302_v50 }
  0xcc   : > { %v622_v46 = vpop.eup %621  ;;  %627 = vlog2.f32 %v411_v42 }
  0xcd   : > { %v361_v55 = vmul.f32 0.6931472, %v622_v46  ;;  %v336_v59 = vadd.f32 %v335_v51, %v328_v54  ;;  %v311_v61 = vadd.f32 %v310_v53, %v285_v58 }
  0xcf   : > { %v362_v62 = vadd.f32 %v361_v55, %v354_v60  ;;  %v337_v0 = vadd.f32 %v336_v59, %v311_v61 }
  0xd0   : > { %v624_v56 = vpop.eup %623 }
  0xd1   : > { %v387_v33 = vmul.f32 0.6931472, %v624_v56  ;;  %v363_v4 = vadd.f32 %v362_v62, %v337_v0 }
  0xd3   : > { %v388_v1 = vadd.f32 %v387_v33, %v380_v63 }
  0xd4   : > { %v626_v26 = vpop.eup %625 }
  0xd5   : > { %v439_v49 = vmul.f32 0.6931472, %v626_v26  ;;  %v389_v7 = vadd.f32 %v388_v1, %v363_v4 }
  0xd6   : > { %v628_v41 = vpop.eup %627 }
  0xd7   : > { %v413_v5 = vmul.f32 0.6931472, %v628_v41  ;;  %v440_v9 = vadd.f32 %v439_v49, %v432_v6 }
  0xd9   : > { %v414_v8 = vadd.f32 %v413_v5, %v406_v3 }
  0xdb   : > { %v415_v57 = vadd.f32 %v414_v8, %v389_v7 }
  0xdd   : > { %v441_v10 = vadd.f32 %v440_v9, %v415_v57 }
  0xdf   : > { %442 = vadd.xlane.f32.xlu0 %v441_v10 }
 0x16c   : > { %v443_v2 = vpop.xlane.xlu0 %442 }
 0x16d   : > { %v444_v11 = vrot.slane %v443_v2, 4 }
 0x16f   : > { %v445_v14 = vadd.f32 %v444_v11, %v443_v2 }
 0x171   : > { %v446_v15 = vrot.slane %v445_v14, 2 }
 0x173   : > { %v447_v16 = vadd.f32 %v446_v15, %v445_v14 }
 0x175   : > { %v448_v17 = vrot.slane %v447_v16, 1 }
 0x177   : > { %v449_v13 = vadd.f32 %v448_v17, %v447_v16 }
 0x179   : > { %553 = vpush %v449_v13 }
 0x1aa   : > { %s554_s27 = spop %553 }
 0x1ab   : > { %v451_v12 = vstv %s554_s27 }
 0x1ac   : > { %452 = vst [vmem:[%s207_s20] sm:$0xff] %v451_v12 }
 0x1ad   : > { %642 = shalt.err (!%p639_p3)
}
 0x1ae   : > { %s643_s9 = scalar_lea.hbm %s830_s30, 128  ;;  %s647_s12 = scalar_lea.hbm %s874_s4, 256 }
 0x1af   : > { %p644_p4 = scmp.ne.s32.totalorder %s830_s30, %s643_s9  ;;  %p648_p9 = scmp.lt.u32.totalorder %s830_s30, %s874_s4 }
 0x1b0   : > { %p649_p10 = scmp.lt.u32.totalorder %s647_s12, %s643_s9  ;;  %p651_p12 = scmp.lt.u32.totalorder %s643_s9, %s830_s30 }
 0x1b1   : > { %p645_p7 = pnand %p644_p4, %p758_p5 }
 0x1b2   : > { %p650_p11 = por %p649_p10, %p648_p9 }
 0x1b3   : > { %p646_p8 = pneg %p645_p7 }
 0x1b4   : > { %p652_p13 = por %p651_p12, %p650_p11 }
 0x1b6   : > { %p653_p0 = pnand %p652_p13, %p646_p8 }
 0x1b8   : > { %656 = shalt.err (!%p653_p0)
}
 0x1b9   : > { %555 = dma.vmem_to_hbm [thread:$0]  (%p758_p5), %s825_s22, 128, %s830_s30, %s454_s5  }
 0x1ba PF: > { %p561_p1 = scmp.ge.s32.totalorder %s691_s18, 2  ;;  %s479_s20 = sand.u32 1, %s679_s15  }
 0x1bb   : > { %s480_s23 = scalar_lea.sflag [#allocation3], %s479_s20 }
 0x1bc   : > { %p558_p2 = pnand %p561_p1, %p762_p6 }
 0x1be   : > { %674 = dma.done.wait (!%p558_p2), %s480_s23, 128  }
 0x1bf   : > { %676 = vsyncadd (!%p558_p2), %s480_s23, 4294967168  ;;  %p14_p3 = scmp.ge.s32.totalorder %s745_s21, 4   ;;  %s877_s15 = smov %s683_s16 }
 0x1c0   : > { %s878_s16 = smov %s687_s17  ;;  %s879_s17 = smov %s756_s24 }
 0x1c1   : > { %s880_s18 = smov %s745_s21  ;;  %16 = sbr.rel (!%p14_p3) target bundleno = 3 (0x3), region = 74 }
 0x1c8   :  { %485 = vsyncpa [#allocation3], 1 }
 0x1c9   :  { %487 = vsyncpa [#allocation3 + $0x1], 1 }

</bundles_post_ra>
